<compile_context>
chip_gen: v7x
topology: tpu7x:2x2x1
jax: 0.10.0
libtpu: 0.0.40
codegen_flags: <defaults>
</compile_context>

<pallas_src>
import functools

import jax
import jax.numpy as jnp
from jax.experimental import pallas as pl
from jax.experimental.pallas import tpu as pltpu

LANE = 128                              # vreg lane width (last dim of blocks)
_TARGET_TILE_BYTES = 4 * 1024 * 1024    # per-input, per-buffer tile size
_VMEM_LIMIT_BYTES = 32 * 1024 * 1024    # fits v5e/v6e (128 MiB) and v7x (64 MiB)


def _round_up(a, m):
    return -(-a // m) * m


def _dice_partial_kernel(x_ref, t_ref, inter_ref, denom_ref, *,
                         rows, block_rows, blocks_per_split):
    """Accumulates per-split partial sums of sigmoid(x)*t and sigmoid(x)+t.

    Grid = (n_splits, blocks_per_split); axis 0 is 'parallel' (one slot per
    TensorCore on v7x), axis 1 streams row-blocks of a (rows, 128) slab.
    Outputs are (1, 8, 128) partial-sum vregs resident across axis 1.
    """
    i = pl.program_id(0)   # split (TensorCore) index
    k = pl.program_id(1)   # row-block index within this split

    @pl.when(k == 0)
    def _init():
        inter_ref[...] = jnp.zeros_like(inter_ref)
        denom_ref[...] = jnp.zeros_like(denom_ref)

    s = jax.nn.sigmoid(x_ref[...].astype(jnp.float32))
    t = t_ref[...].astype(jnp.float32)

    # Row mask: handles (a) the globally-last partial block and (b) a fully
    # out-of-range (clamped, duplicated) block when n_blocks is odd and the
    # work is split across two cores.  Scalar row count only -- no full-tile
    # int32 element indices, no int32 overflow for huge inputs.
    b = i * blocks_per_split + k                  # logical global block index
    valid_rows = rows - b * block_rows            # may be <=0 or >block_rows
    row = jax.lax.broadcasted_iota(jnp.int32, (block_rows, 1), 0)
    mask = row < valid_rows
    # NOTE: keep this a true select (jnp.where), NOT `mask * s`: out-of-bounds
    # rows are garbage and sigmoid(garbage) can be NaN; a multiply would leak
    # NaN into the accumulators.
    s = jnp.where(mask, s, 0.0)
    t = jnp.where(mask, t, 0.0)

    # In-block VPU reduction tree to a single (1, 8, 128) vreg per quantity.
    inter_ref[...] += (s * t).reshape(1, -1, 8, LANE).sum(axis=1)
    denom_ref[...] += (s + t).reshape(1, -1, 8, LANE).sum(axis=1)


def dice_loss(inputs, targets, smooth=1.0):
    """Pallas equivalent of DiceLoss.forward(inputs, targets, smooth)."""
    x = inputs.reshape(-1)
    t = targets.reshape(-1)
    n = x.shape[0]

    n_main = (n // LANE) * LANE       # lane-aligned prefix handled by kernel
    tail = n - n_main                 # <=127 ragged elements handled in jnp

    inter = jnp.float32(0.0)
    denom = jnp.float32(0.0)

    if n_main:
        rows = n_main // LANE
        x2 = x[:n_main].reshape(rows, LANE)
        t2 = t[:n_main].reshape(rows, LANE)

        # Tile sizing: ~4 MiB per input tile, row count a multiple of 8.
        itemsize = max(x2.dtype.itemsize, t2.dtype.itemsize)
        max_rows = max(8, (_TARGET_TILE_BYTES // (LANE * itemsize)) // 8 * 8)
        block_rows = min(_round_up(rows, 8), max_rows)
        n_blocks = pl.cdiv(rows, block_rows)

        # Split row-blocks across a leading 'parallel' axis (2 TensorCores on
        # v7x; plain sequential loop on v5e/v6e).
        n_splits = 2 if n_blocks >= 2 else 1
        blocks_per_split = pl.cdiv(n_blocks, n_splits)

        def in_map(i, k):
            b = i * blocks_per_split + k
            # Clamp so a (masked-out) overhang block never indexes past HBM.
            return (jnp.minimum(b, n_blocks - 1), 0)

        out_map = lambda i, k: (i, 0, 0)

        kernel = functools.partial(
            _dice_partial_kernel,
            rows=rows, block_rows=block_rows,
            blocks_per_split=blocks_per_split)

        inter_p, denom_p = pl.pallas_call(
            kernel,
            out_shape=(
                jax.ShapeDtypeStruct((n_splits, 8, LANE), jnp.float32),
                jax.ShapeDtypeStruct((n_splits, 8, LANE), jnp.float32),
            ),
            grid_spec=pltpu.PrefetchScalarGridSpec(
                num_scalar_prefetch=0,
                grid=(n_splits, blocks_per_split),
                in_specs=[
                    pl.BlockSpec((block_rows, LANE), in_map),
                    pl.BlockSpec((block_rows, LANE), in_map),
                ],
                out_specs=[
                    pl.BlockSpec((1, 8, LANE), out_map),
                    pl.BlockSpec((1, 8, LANE), out_map),
                ],
            ),
            compiler_params=pltpu.CompilerParams(
                dimension_semantics=("parallel", "arbitrary"),
                vmem_limit_bytes=_VMEM_LIMIT_BYTES,
                allow_input_fusion=[True, True],
            ),
        )(x2, t2)

        # Final cross-lane reduction of the tiny per-split partials (jnp side).
        inter = inter + jnp.sum(inter_p)
        denom = denom + jnp.sum(denom_p)

    if tail:
        xt = jax.nn.sigmoid(x[n_main:].astype(jnp.float32))
        tt = t[n_main:].astype(jnp.float32)
        inter = inter + jnp.sum(xt * tt)
        denom = denom + jnp.sum(xt) + jnp.sum(tt)

    dice = (2.0 * inter + smooth) / (denom + smooth)
    return 1.0 - dice


def dice_loss_ref(inputs, targets, smooth=1.0):
    """Pure-JAX reference matching the PyTorch semantics."""
    x = jax.nn.sigmoid(inputs.reshape(-1).astype(jnp.float32))
    t = targets.reshape(-1).astype(jnp.float32)
    inter = jnp.sum(x * t)
    dice = (2.0 * inter + smooth) / (jnp.sum(x) + jnp.sum(t) + smooth)
    return 1.0 - dice


if __name__ == "__main__":
    key = jax.random.PRNGKey(0)
    k1, k2 = jax.random.split(key)
    # Segmentation-style loss shapes: (B, C, H, W).
    inputs = jax.random.normal(k1, (2, 4, 16, 16), dtype=jnp.float32)
    targets = (jax.random.uniform(k2, (2, 4, 16, 16)) > 0.5).astype(jnp.float32)

    loss = jax.block_until_ready(jax.jit(dice_loss)(inputs, targets))
    ref = jax.block_until_ready(dice_loss_ref(inputs, targets, smooth=1.0))

    assert jnp.allclose(loss, ref, rtol=1e-5, atol=1e-5), (loss, ref)
    print("KERNEL_OK")
</pallas_src>

<mosaic_0001>
module attributes {stable_mosaic.version = 11 : i64} {
  func.func @_dice_partial_kernel(%arg0: i32, %arg1: i32, %arg2: memref<16x128xf32, #tpu.memory_space<vmem>>, %arg3: memref<16x128xf32, #tpu.memory_space<vmem>>, %arg4: memref<1x8x128xf32, #tpu.memory_space<vmem>>, %arg5: memref<1x8x128xf32, #tpu.memory_space<vmem>>) attributes {dimension_semantics = [#tpu.dimension_semantics<parallel>, #tpu.dimension_semantics<arbitrary>], iteration_bounds = array<i64: 1, 1>, scalar_prefetch = 0 : i64, scratch_operands = 0 : i64, tpu.core_type = #tpu.core_type<tc>, window_params = [{transform_indices = @transform_0, window_bounds = array<i64: 16, 128>}, {transform_indices = @transform_1, window_bounds = array<i64: 16, 128>}, {transform_indices = @transform_2, window_bounds = array<i64: 1, 8, 128>}, {transform_indices = @transform_3, window_bounds = array<i64: 1, 8, 128>}]} {
    %c0_i32 = arith.constant 0 : i32
    %0 = arith.cmpi eq, %arg1, %c0_i32 : i32
    %1 = arith.extui %0 : i1 to i32
    %c0_i32_0 = arith.constant 0 : i32
    %2 = arith.cmpi ne, %1, %c0_i32_0 : i32
    scf.if %2 {
      %cst_21 = arith.constant 0.000000e+00 : f32
      %37 = vector.broadcast %cst_21 : f32 to vector<1x8x128xf32>
      %c0_22 = arith.constant 0 : index
      %c0_23 = arith.constant 0 : index
      %c0_24 = arith.constant 0 : index
      %38 = vector.load %arg4[%c0_22, %c0_23, %c0_24] : memref<1x8x128xf32, #tpu.memory_space<vmem>>, vector<1x8x128xf32>
      tpu.vector_store %arg4[%c0_22, %c0_23, %c0_24], %37 {strides = array<i32>} : memref<1x8x128xf32, #tpu.memory_space<vmem>>, vector<1x8x128xf32>,
      %cst_25 = arith.constant 0.000000e+00 : f32
      %39 = vector.broadcast %cst_25 : f32 to vector<1x8x128xf32>
      %c0_26 = arith.constant 0 : index
      %c0_27 = arith.constant 0 : index
      %c0_28 = arith.constant 0 : index
      %40 = vector.load %arg5[%c0_26, %c0_27, %c0_28] : memref<1x8x128xf32, #tpu.memory_space<vmem>>, vector<1x8x128xf32>
      tpu.vector_store %arg5[%c0_26, %c0_27, %c0_28], %39 {strides = array<i32>} : memref<1x8x128xf32, #tpu.memory_space<vmem>>, vector<1x8x128xf32>,
    } else {
    }
    %c0 = arith.constant 0 : index
    %c0_1 = arith.constant 0 : index
    %3 = vector.load %arg2[%c0, %c0_1] : memref<16x128xf32, #tpu.memory_space<vmem>>, vector<16x128xf32>
    %4 = arith.negf %3 : vector<16x128xf32>
    %5 = math.exp %4 : vector<16x128xf32>
    %cst = arith.constant 1.000000e+00 : f32
    %6 = vector.broadcast %cst : f32 to vector<16x128xf32>
    %7 = arith.addf %6, %5 : vector<16x128xf32>
    %8 = arith.divf %6, %7 : vector<16x128xf32>
    %c0_2 = arith.constant 0 : index
    %c0_3 = arith.constant 0 : index
    %9 = vector.load %arg3[%c0_2, %c0_3] : memref<16x128xf32, #tpu.memory_space<vmem>>, vector<16x128xf32>
    %c1_i32 = arith.constant 1 : i32
    %10 = arith.muli %arg0, %c1_i32 : i32
    %11 = arith.addi %10, %arg1 : i32
    %c16_i32 = arith.constant 16 : i32
    %12 = arith.muli %11, %c16_i32 : i32
    %c16_i32_4 = arith.constant 16 : i32
    %13 = arith.subi %c16_i32_4, %12 : i32
    %14 = tpu.iota {dimensions = array<i32: 0>} : vector<16x1xi32>
    %15 = vector.broadcast %13 : i32 to vector<16x1xi32>
    %16 = arith.cmpi slt, %14, %15 : vector<16x1xi32>
    %cst_5 = arith.constant 0.000000e+00 : f32
    %17 = vector.shape_cast %16 : vector<16x1xi1> to vector<16x1xi1>
    %18 = vector.broadcast %17 : vector<16x1xi1> to vector<16x128xi1>
    %19 = vector.broadcast %cst_5 : f32 to vector<16x128xf32>
    %20 = arith.select %18, %8, %19 : vector<16x128xi1>, vector<16x128xf32>
    %cst_6 = arith.constant 0.000000e+00 : f32
    %21 = vector.shape_cast %16 : vector<16x1xi1> to vector<16x1xi1>
    %22 = vector.broadcast %21 : vector<16x1xi1> to vector<16x128xi1>
    %23 = vector.broadcast %cst_6 : f32 to vector<16x128xf32>
    %24 = arith.select %22, %9, %23 : vector<16x128xi1>, vector<16x128xf32>
    %c0_7 = arith.constant 0 : index
    %c0_8 = arith.constant 0 : index
    %c0_9 = arith.constant 0 : index
    %25 = vector.load %arg4[%c0_7, %c0_8, %c0_9] : memref<1x8x128xf32, #tpu.memory_space<vmem>>, vector<1x8x128xf32>
    %26 = arith.mulf %20, %24 : vector<16x128xf32>
    %27 = vector.shape_cast %26 : vector<16x128xf32> to vector<1x2x8x128xf32>
    %cst_10 = arith.constant dense<0.000000e+00> : vector<1x8x128xf32>
    %28 = vector.multi_reduction <add>, %27, %cst_10 [1] : vector<1x2x8x128xf32> to vector<1x8x128xf32>
    %29 = arith.addf %25, %28 : vector<1x8x128xf32>
    %c0_11 = arith.constant 0 : index
    %c0_12 = arith.constant 0 : index
    %c0_13 = arith.constant 0 : index
    %30 = vector.load %arg4[%c0_11, %c0_12, %c0_13] : memref<1x8x128xf32, #tpu.memory_space<vmem>>, vector<1x8x128xf32>
    tpu.vector_store %arg4[%c0_11, %c0_12, %c0_13], %29 {strides = array<i32>} : memref<1x8x128xf32, #tpu.memory_space<vmem>>, vector<1x8x128xf32>,
    %c0_14 = arith.constant 0 : index
    %c0_15 = arith.constant 0 : index
    %c0_16 = arith.constant 0 : index
    %31 = vector.load %arg5[%c0_14, %c0_15, %c0_16] : memref<1x8x128xf32, #tpu.memory_space<vmem>>, vector<1x8x128xf32>
    %32 = arith.addf %20, %24 : vector<16x128xf32>
    %33 = vector.shape_cast %32 : vector<16x128xf32> to vector<1x2x8x128xf32>
    %cst_17 = arith.constant dense<0.000000e+00> : vector<1x8x128xf32>
    %34 = vector.multi_reduction <add>, %33, %cst_17 [1] : vector<1x2x8x128xf32> to vector<1x8x128xf32>
    %35 = arith.addf %31, %34 : vector<1x8x128xf32>
    %c0_18 = arith.constant 0 : index
    %c0_19 = arith.constant 0 : index
    %c0_20 = arith.constant 0 : index
    %36 = vector.load %arg5[%c0_18, %c0_19, %c0_20] : memref<1x8x128xf32, #tpu.memory_space<vmem>>, vector<1x8x128xf32>
    tpu.vector_store %arg5[%c0_18, %c0_19, %c0_20], %35 {strides = array<i32>} : memref<1x8x128xf32, #tpu.memory_space<vmem>>, vector<1x8x128xf32>,
    return
  }
  func.func @transform_0(%arg0: i32, %arg1: i32) -> (i32, i32) {
    %c1_i32 = arith.constant 1 : i32
    %0 = arith.muli %arg0, %c1_i32 : i32
    %1 = arith.addi %0, %arg1 : i32
    %c0_i32 = arith.constant 0 : i32
    %2 = arith.minsi %1, %c0_i32 : i32
    %c0_i32_0 = arith.constant 0 : i32
    %c0_i32_1 = arith.constant 0 : i32
    return %2, %c0_i32_0 : i32, i32
  }
  func.func @transform_1(%arg0: i32, %arg1: i32) -> (i32, i32) {
    %c1_i32 = arith.constant 1 : i32
    %0 = arith.muli %arg0, %c1_i32 : i32
    %1 = arith.addi %0, %arg1 : i32
    %c0_i32 = arith.constant 0 : i32
    %2 = arith.minsi %1, %c0_i32 : i32
    %c0_i32_0 = arith.constant 0 : i32
    %c0_i32_1 = arith.constant 0 : i32
    return %2, %c0_i32_0 : i32, i32
  }
  func.func @transform_2(%arg0: i32, %arg1: i32) -> (i32, i32, i32) {
    %c0_i32 = arith.constant 0 : i32
    %c0_i32_0 = arith.constant 0 : i32
    %c0_i32_1 = arith.constant 0 : i32
    return %arg0, %c0_i32, %c0_i32_0 : i32, i32, i32
  }
  func.func @transform_3(%arg0: i32, %arg1: i32) -> (i32, i32, i32) {
    %c0_i32 = arith.constant 0 : i32
    %c0_i32_0 = arith.constant 0 : i32
    %c0_i32_1 = arith.constant 0 : i32
    return %arg0, %c0_i32, %c0_i32_0 : i32, i32, i32
  }
}

</mosaic_0001>

<bundles_post_ra>
// kernel: dice_loss.1
= control target key start
LH: loop header
LB: loop body
LE: loop exit
PB: predicated region body
PF: predicated region fallthrough
CT: control target
= control target key end

     0   :  { %s197_s0 = inlined_call_operand.vmem [shape: f32[16,128], index: 0, kind: input, shape index: {}]   ;;  %s198_s1 = inlined_call_operand.vmem [shape: f32[16,128], index: 1, kind: input, shape index: {}]   ;;  %s199_s2 = inlined_call_operand.vmem [shape: f32[1,8,128], index: 2, kind: output, shape index: {0}]   ;;  %s200_s3 = inlined_call_operand.vmem [shape: f32[1,8,128], index: 3, kind: output, shape index: {1}]  }
   0x1   :  { %v83_v0 = vld [vmem:[%s197_s0] sm:$0xff]  ;;  %v84_v1 = vld [vmem:[%s197_s0 + $0x8] sm:$0xff] }
   0x2   :  { %v148_v2 = vmul.f32 -1.442695, %v83_v0  ;;  %v149_v3 = vmul.f32 -1.442695, %v84_v1  ;;  %v97_v8 = vld [vmem:[%s198_s1] sm:$0xff]  ;;  %v98_v9 = vld [vmem:[%s198_s1 + $0x8] sm:$0xff] }
   0x4   :  { %151 = vpow2.f32 %v148_v2 }
   0x5   :  { %153 = vpow2.f32 %v149_v3 }
   0xe   :  { %v152_v4 = vpop.eup %151 }
   0xf   :  { %v154_v5 = vpop.eup %153  ;;  %v91_v6 = vadd.f32 1.0, %v152_v4 }
  0x10   :  { %v92_v7 = vadd.f32 1.0, %v154_v5 }
  0x11   :  { %155 = vrcp.f32 %v91_v6 }
  0x12   :  { %157 = vrcp.f32 %v92_v7 }
  0x1b   :  { %v156_v10 = vpop.eup %155 }
  0x1c   :  { %v158_v11 = vpop.eup %157  ;;  %v117_v12 = vmul.f32 %v156_v10, %v97_v8  ;;  %v123_v13 = vadd.f32 %v156_v10, %v97_v8 }
  0x1d   :  { %v118_v14 = vmul.f32 %v158_v11, %v98_v9  ;;  %v124_v15 = vadd.f32 %v158_v11, %v98_v9 }
  0x1f   :  { %v119_v16 = vadd.f32 %v118_v14, %v117_v12  ;;  %v125_v17 = vadd.f32 %v124_v15, %v123_v13 }
  0x21   :  { %121 = vst [vmem:[%s199_s2] sm:$0xff] %v119_v16  ;;  %127 = vst [vmem:[%s200_s3] sm:$0xff] %v125_v17 }

</bundles_post_ra>
